<compile_context>
chip_gen: v7x
topology: tpu7x:2x2x1
jax: 0.10.0
libtpu: 0.0.40
codegen_flags: <defaults>
</compile_context>

<pallas_src>
import functools

import jax
import jax.numpy as jnp
from jax.experimental import pallas as pl
from jax.experimental.pallas import tpu as pltpu


# -----------------------------------------------------------------------------
# Fused kernel:  LayerNorm -> sublayer -> (dropout = identity) -> + x
# -----------------------------------------------------------------------------
def _sublayer_connection_kernel(x_ref, g_ref, b_ref, *rest, sublayer_fn, eps):
    param_refs = rest[:-1]
    o_ref = rest[-1]

    x = x_ref[...]                                   # (tm, D) f32
    d = x.shape[-1]

    # LayerNorm (annotated-transformer style, unbiased std, eps added to std).
    mu = jnp.mean(x, axis=-1, keepdims=True)
    xc = x - mu
    var = jnp.sum(xc * xc, axis=-1, keepdims=True) * (1.0 / (d - 1))
    inv = pl.reciprocal(jnp.sqrt(var) + eps, approx=True)   # EUP path
    normed = xc * inv * g_ref[...] + b_ref[...]

    # Sublayer, traced inline into the fused kernel (stays in VMEM/vregs).
    y = sublayer_fn(normed, *[r[...] for r in param_refs])

    # Dropout is identity in eval mode; residual add fused in-kernel.
    # TODO(synk): training-mode dropout would need pltpu.prng_* masking here.
    o_ref[...] = x + y


def ffw_sublayer(normed, w1, b1, w2, b2):
    """Position-wise feed-forward (Linear -> ReLU -> Linear) as the concrete
    `sublayer`. Weights are bf16 so the MXU gets bf16 operands; accumulation
    and element-wise math are f32."""
    h = jnp.dot(normed.astype(jnp.bfloat16), w1,
                preferred_element_type=jnp.float32) + b1
    h = jnp.maximum(h, 0.0)
    return jnp.dot(h.astype(jnp.bfloat16), w2,
                   preferred_element_type=jnp.float32) + b2


# -----------------------------------------------------------------------------
# Wrapper
# -----------------------------------------------------------------------------
def _row_tile(m, max_tile=256):
    if m % 8 != 0:
        return m                      # full-array block is always legal
    tm = min(max_tile, m)
    while m % tm != 0:
        tm -= 8
    return tm


def sublayer_connection(x, ln_gamma, ln_beta, sublayer_fn, sublayer_params,
                        *, eps=1e-6, max_row_tile=256):
    """x: (B, N, D) float32.  Returns x + sublayer(LayerNorm(x))."""
    B, N, D = x.shape
    M = B * N
    x2 = x.reshape(M, D)
    tm = _row_tile(M, max_row_tile)
    grid = (M // tm,)

    def _resident(a):
        nd = a.ndim
        return pl.BlockSpec(a.shape, lambda i, _nd=nd: (0,) * _nd)

    in_specs = [
        pl.BlockSpec((tm, D), lambda i: (i, 0)),          # x, tiled over rows
        _resident(ln_gamma),
        _resident(ln_beta),
    ] + [_resident(p) for p in sublayer_params]           # weights resident

    kernel = functools.partial(_sublayer_connection_kernel,
                               sublayer_fn=sublayer_fn, eps=eps)

    out = pl.pallas_call(
        kernel,
        out_shape=jax.ShapeDtypeStruct((M, D), jnp.float32),
        grid_spec=pltpu.PrefetchScalarGridSpec(
            num_scalar_prefetch=0,
            grid=grid,
            in_specs=in_specs,
            out_specs=pl.BlockSpec((tm, D), lambda i: (i, 0)),
        ),
        compiler_params=pltpu.CompilerParams(
            dimension_semantics=("parallel",),    # shard rows across v7x's 2 TCs
            vmem_limit_bytes=64 * 1024 * 1024,    # headroom vs v5e's 16 MiB default
        ),
    )(x2, ln_gamma, ln_beta, *sublayer_params)
    return out.reshape(B, N, D)


# -----------------------------------------------------------------------------
# Demo / self-check
# -----------------------------------------------------------------------------
if __name__ == "__main__":
    key = jax.random.PRNGKey(0)
    kx, k1, k2 = jax.random.split(key, 3)

    # size chosen lane-dense (128) per the perf review; seq kept small.
    B, N, D, D_FF = 2, 8, 128, 512
    EPS = 1e-6

    x = jax.random.normal(kx, (B, N, D), jnp.float32)
    ln_gamma = jnp.ones((1, D), jnp.float32)
    ln_beta = jnp.zeros((1, D), jnp.float32)
    w1 = jax.random.normal(k1, (D, D_FF), jnp.float32) * 0.02
    b1 = jnp.zeros((1, D_FF), jnp.float32)
    w2 = jax.random.normal(k2, (D_FF, D), jnp.float32) * 0.02
    b2 = jnp.zeros((1, D), jnp.float32)

    # bf16 weights -> full-rate MXU matmuls; f32 accumulation in the kernel.
    params_bf16 = (w1.astype(jnp.bfloat16), b1,
                   w2.astype(jnp.bfloat16), b2)

    out = sublayer_connection(x, ln_gamma, ln_beta, ffw_sublayer, params_bf16,
                              eps=EPS)
    out = jax.block_until_ready(out)

    # Pure-JAX f32 reference (exact module semantics, eval-mode dropout).
    def reference(xx):
        mu = xx.mean(-1, keepdims=True)
        std = jnp.sqrt(((xx - mu) ** 2).sum(-1, keepdims=True) / (D - 1))
        normed = ln_gamma * (xx - mu) / (std + EPS) + ln_beta
        h = jnp.maximum(normed @ w1 + b1, 0.0)
        return xx + (h @ w2 + b2)

    ref = reference(x)
    assert out.shape == (B, N, D) and out.dtype == jnp.float32
    err = float(jnp.max(jnp.abs(out - ref)))
    assert jnp.allclose(out, ref, rtol=5e-2, atol=5e-2), err

    # Larger case exercises the row-tiled grid (grid=(8,), tile=256 rows) and
    # the "parallel" dimension semantics.
    x_big = jax.random.normal(jax.random.PRNGKey(1), (4, 512, D), jnp.float32)
    out_big = jax.block_until_ready(
        sublayer_connection(x_big, ln_gamma, ln_beta, ffw_sublayer,
                            params_bf16, eps=EPS))
    ref_big = reference(x_big)
    assert out_big.shape == (4, 512, D)
    assert jnp.allclose(out_big, ref_big, rtol=5e-2, atol=5e-2)

    print("KERNEL_OK")
</pallas_src>

<mosaic_0001>
module attributes {stable_mosaic.version = 11 : i64} {
  func.func @_sublayer_connection_kernel(%arg0: i32, %arg1: memref<16x128xf32, #tpu.memory_space<vmem>>, %arg2: memref<1x128xf32, #tpu.memory_space<vmem>>, %arg3: memref<1x128xf32, #tpu.memory_space<vmem>>, %arg4: memref<128x512xbf16, #tpu.memory_space<vmem>>, %arg5: memref<1x512xf32, #tpu.memory_space<vmem>>, %arg6: memref<512x128xbf16, #tpu.memory_space<vmem>>, %arg7: memref<1x128xf32, #tpu.memory_space<vmem>>, %arg8: memref<16x128xf32, #tpu.memory_space<vmem>>) attributes {dimension_semantics = [#tpu.dimension_semantics<parallel>], iteration_bounds = array<i64: 1>, scalar_prefetch = 0 : i64, scratch_operands = 0 : i64, tpu.core_type = #tpu.core_type<tc>, window_params = [{transform_indices = @transform_0, window_bounds = array<i64: 16, 128>}, {pipeline_mode = #tpu.pipeline_mode<synchronous>, transform_indices = @transform_1, window_bounds = array<i64: 1, 128>}, {pipeline_mode = #tpu.pipeline_mode<synchronous>, transform_indices = @transform_2, window_bounds = array<i64: 1, 128>}, {pipeline_mode = #tpu.pipeline_mode<synchronous>, transform_indices = @transform_3, window_bounds = array<i64: 128, 512>}, {pipeline_mode = #tpu.pipeline_mode<synchronous>, transform_indices = @transform_4, window_bounds = array<i64: 1, 512>}, {pipeline_mode = #tpu.pipeline_mode<synchronous>, transform_indices = @transform_5, window_bounds = array<i64: 512, 128>}, {pipeline_mode = #tpu.pipeline_mode<synchronous>, transform_indices = @transform_6, window_bounds = array<i64: 1, 128>}, {transform_indices = @transform_7, window_bounds = array<i64: 16, 128>}]} {
    %c0 = arith.constant 0 : index
    %c0_0 = arith.constant 0 : index
    %0 = vector.load %arg1[%c0, %c0_0] : memref<16x128xf32, #tpu.memory_space<vmem>>, vector<16x128xf32>
    %cst = arith.constant dense<0.000000e+00> : vector<16xf32>
    %1 = vector.multi_reduction <add>, %0, %cst [1] : vector<16x128xf32> to vector<16xf32>
    %2 = vector.shape_cast %1 : vector<16xf32> to vector<16x1xf32>
    %cst_1 = arith.constant 1.280000e+02 : f32
    %3 = vector.broadcast %cst_1 : f32 to vector<16x1xf32>
    %4 = arith.divf %2, %3 : vector<16x1xf32>
    %5 = vector.broadcast %4 : vector<16x1xf32> to vector<16x128xf32>
    %6 = arith.subf %0, %5 : vector<16x128xf32>
    %7 = arith.mulf %6, %6 : vector<16x128xf32>
    %cst_2 = arith.constant dense<0.000000e+00> : vector<16xf32>
    %8 = vector.multi_reduction <add>, %7, %cst_2 [1] : vector<16x128xf32> to vector<16xf32>
    %9 = vector.shape_cast %8 : vector<16xf32> to vector<16x1xf32>
    %cst_3 = arith.constant 0.00787401571 : f32
    %10 = vector.broadcast %cst_3 : f32 to vector<16x1xf32>
    %11 = arith.mulf %9, %10 : vector<16x1xf32>
    %12 = math.sqrt %11 : vector<16x1xf32>
    %cst_4 = arith.constant 9.99999997E-7 : f32
    %13 = vector.broadcast %cst_4 : f32 to vector<16x1xf32>
    %14 = arith.addf %12, %13 : vector<16x1xf32>
    %15 = tpu.reciprocal %14 {approx = true} : vector<16x1xf32> -> vector<16x1xf32>
    %16 = vector.broadcast %15 : vector<16x1xf32> to vector<16x128xf32>
    %17 = arith.mulf %6, %16 : vector<16x128xf32>
    %c0_5 = arith.constant 0 : index
    %c0_6 = arith.constant 0 : index
    %18 = vector.load %arg2[%c0_5, %c0_6] : memref<1x128xf32, #tpu.memory_space<vmem>>, vector<1x128xf32>
    %19 = vector.broadcast %18 : vector<1x128xf32> to vector<16x128xf32>
    %20 = arith.mulf %17, %19 : vector<16x128xf32>
    %c0_7 = arith.constant 0 : index
    %c0_8 = arith.constant 0 : index
    %21 = vector.load %arg3[%c0_7, %c0_8] : memref<1x128xf32, #tpu.memory_space<vmem>>, vector<1x128xf32>
    %22 = vector.broadcast %21 : vector<1x128xf32> to vector<16x128xf32>
    %23 = arith.addf %20, %22 : vector<16x128xf32>
    %c0_9 = arith.constant 0 : index
    %c0_10 = arith.constant 0 : index
    %24 = vector.load %arg4[%c0_9, %c0_10] : memref<128x512xbf16, #tpu.memory_space<vmem>>, vector<128x512xbf16>
    %c0_11 = arith.constant 0 : index
    %c0_12 = arith.constant 0 : index
    %25 = vector.load %arg5[%c0_11, %c0_12] : memref<1x512xf32, #tpu.memory_space<vmem>>, vector<1x512xf32>
    %c0_13 = arith.constant 0 : index
    %c0_14 = arith.constant 0 : index
    %26 = vector.load %arg6[%c0_13, %c0_14] : memref<512x128xbf16, #tpu.memory_space<vmem>>, vector<512x128xbf16>
    %c0_15 = arith.constant 0 : index
    %c0_16 = arith.constant 0 : index
    %27 = vector.load %arg7[%c0_15, %c0_16] : memref<1x128xf32, #tpu.memory_space<vmem>>, vector<1x128xf32>
    %28 = arith.truncf %23 : vector<16x128xf32> to vector<16x128xbf16>
    %cst_17 = arith.constant dense<0.000000e+00> : vector<16x512xf32>
    %29 = tpu.matmul %28, %24, %cst_17 {dimension_numbers = #tpu.dot_dimension_numbers<[1], [0], [0], [1], [0, 0, 1, 1], [], []>} : vector<16x128xbf16>, vector<128x512xbf16>, vector<16x512xf32> -> vector<16x512xf32>
    %30 = vector.broadcast %25 : vector<1x512xf32> to vector<16x512xf32>
    %31 = arith.addf %29, %30 : vector<16x512xf32>
    %cst_18 = arith.constant 0.000000e+00 : f32
    %32 = vector.broadcast %cst_18 : f32 to vector<16x512xf32>
    %33 = arith.maximumf %31, %32 : vector<16x512xf32>
    %34 = arith.truncf %33 : vector<16x512xf32> to vector<16x512xbf16>
    %cst_19 = arith.constant dense<0.000000e+00> : vector<16x128xf32>
    %35 = tpu.matmul %34, %26, %cst_19 {dimension_numbers = #tpu.dot_dimension_numbers<[1], [0], [0], [1], [0, 0, 1, 1], [], []>} : vector<16x512xbf16>, vector<512x128xbf16>, vector<16x128xf32> -> vector<16x128xf32>
    %36 = vector.broadcast %27 : vector<1x128xf32> to vector<16x128xf32>
    %37 = arith.addf %35, %36 : vector<16x128xf32>
    %38 = arith.addf %0, %37 : vector<16x128xf32>
    %c0_20 = arith.constant 0 : index
    %c0_21 = arith.constant 0 : index
    %39 = vector.load %arg8[%c0_20, %c0_21] : memref<16x128xf32, #tpu.memory_space<vmem>>, vector<16x128xf32>
    tpu.vector_store %arg8[%c0_20, %c0_21], %38 {strides = array<i32>} : memref<16x128xf32, #tpu.memory_space<vmem>>, vector<16x128xf32>,
    return
  }
  func.func @transform_0(%arg0: i32) -> (i32, i32) {
    %c0_i32 = arith.constant 0 : i32
    %c0_i32_0 = arith.constant 0 : i32
    return %arg0, %c0_i32 : i32, i32
  }
  func.func @transform_1(%arg0: i32) -> (i32, i32) {
    %c0_i32 = arith.constant 0 : i32
    %c0_i32_0 = arith.constant 0 : i32
    %c0_i32_1 = arith.constant 0 : i32
    return %c0_i32, %c0_i32_0 : i32, i32
  }
  func.func @transform_2(%arg0: i32) -> (i32, i32) {
    %c0_i32 = arith.constant 0 : i32
    %c0_i32_0 = arith.constant 0 : i32
    %c0_i32_1 = arith.constant 0 : i32
    return %c0_i32, %c0_i32_0 : i32, i32
  }
  func.func @transform_3(%arg0: i32) -> (i32, i32) {
    %c0_i32 = arith.constant 0 : i32
    %c0_i32_0 = arith.constant 0 : i32
    %c0_i32_1 = arith.constant 0 : i32
    return %c0_i32, %c0_i32_0 : i32, i32
  }
  func.func @transform_4(%arg0: i32) -> (i32, i32) {
    %c0_i32 = arith.constant 0 : i32
    %c0_i32_0 = arith.constant 0 : i32
    %c0_i32_1 = arith.constant 0 : i32
    return %c0_i32, %c0_i32_0 : i32, i32
  }
  func.func @transform_5(%arg0: i32) -> (i32, i32) {
    %c0_i32 = arith.constant 0 : i32
    %c0_i32_0 = arith.constant 0 : i32
    %c0_i32_1 = arith.constant 0 : i32
    return %c0_i32, %c0_i32_0 : i32, i32
  }
  func.func @transform_6(%arg0: i32) -> (i32, i32) {
    %c0_i32 = arith.constant 0 : i32
    %c0_i32_0 = arith.constant 0 : i32
    %c0_i32_1 = arith.constant 0 : i32
    return %c0_i32, %c0_i32_0 : i32, i32
  }
  func.func @transform_7(%arg0: i32) -> (i32, i32) {
    %c0_i32 = arith.constant 0 : i32
    %c0_i32_0 = arith.constant 0 : i32
    return %arg0, %c0_i32 : i32, i32
  }
}

</mosaic_0001>

<bundles_post_ra>
// kernel: tpu_custom_call.1
= control target key start
LH: loop header
LB: loop body
LE: loop exit
PB: predicated region body
PF: predicated region fallthrough
CT: control target
= control target key end

     0   :  { %12 = vsyncpa [#allocation3], 0  ;;  %s1438_s0 = inlined_call_operand.hbm [shape: f32[16,128], index: 0, kind: input, shape index: {}]   ;;  %s1439_s1 = inlined_call_operand.hbm [shape: f32[1,128], index: 1, kind: input, shape index: {}]   ;;  %s1440_s2 = inlined_call_operand.hbm [shape: f32[1,128], index: 2, kind: input, shape index: {}]   ;;  %s1441_s3 = inlined_call_operand.hbm [shape: bf16[128,512], index: 3, kind: input, shape index: {}]   ;;  %s1442_s4 = inlined_call_operand.hbm [shape: f32[1,512], index: 4, kind: input, shape index: {}]   ;;  %s1443_s5 = inlined_call_operand.hbm [shape: bf16[512,128], index: 5, kind: input, shape index: {}]   ;;  %s1444_s6 = inlined_call_operand.hbm [shape: f32[1,128], index: 6, kind: input, shape index: {}]   ;;  %s1445_s7 = inlined_call_operand.hbm [shape: f32[16,128], index: 7, kind: output, shape index: {}]  }
   0x1   :  { %13 = vsyncpa [#allocation6], 0 }
   0x2   :  { %14 = vsyncpa [#allocation9], 0 }
   0x3   :  { %15 = vsyncpa [#allocation12], 0 }
   0x4   :  { %16 = vsyncpa [#allocation4], 0  ;;  %s1254_s24 = smov [#allocation5]   ;;  %s1255_s26 = smov [#allocation8]  }
   0x5   :  { %s35_s25 = sshll.u32 %s1254_s24, 4  ;;  %s54_s27 = sshll.u32 %s1255_s26, 4  ;;  %s36_s25 = int_to_ptr.vmem [resolvable:$true] %s35_s25  ;;  %s1309_s27 = int_to_ptr.vmem [resolvable:$true] %s54_s27 }
   0x6   :  { %s1068_s30 = scalar_lea.hbm %s1439_s1, 16 }
   0x7   :  { %p1069_p0 = scmp.ne.s32.totalorder %s1439_s1, %s1068_s30  ;;  %p1072_p1 = scmp.lt.u32.totalorder %s1068_s30, %s1439_s1 }
   0x9   :  { %p1074_p2 = pnand %p1072_p1, %p1069_p0 }
   0xb   :  { %1077 = shalt.err (!%p1074_p2)
}
   0xc   :  { %s1078_s12 = scalar_lea.vmem %s36_s25, 16  ;;  %s1082_s13 = scalar_lea.vmem %s36_s25, 32 }
   0xd   :  { %p1079_p3 = scmp.ne.s32.totalorder %s36_s25, %s1078_s12  ;;  %p1083_p4 = scmp.lt.s32.totalorder %s36_s25, %s36_s25 }
   0xe   :  { %p1084_p5 = scmp.lt.s32.totalorder %s1082_s13, %s1078_s12 }
  0x10   :  { %p1085_p6 = por %p1084_p5, %p1083_p4 }
  0x12   :  { %p1086_p7 = pnand %p1085_p6, %p1079_p3 }
  0x14   :  { %1089 = shalt.err (!%p1086_p7)
}
  0x15   :  { %38 = dma.hbm_to_vmem [thread:$0]  %s1439_s1, 16, %s36_s25, [#allocation6]  }
  0x16   :  { %s1090_s18 = scalar_lea.hbm %s1441_s3, 4096 }
  0x17   :  { %p1091_p8 = scmp.ne.s32.totalorder %s1441_s3, %s1090_s18  ;;  %p1094_p9 = scmp.lt.u32.totalorder %s1090_s18, %s1441_s3 }
  0x19   :  { %p1096_p10 = pnand %p1094_p9, %p1091_p8 }
  0x1b   :  { %1099 = shalt.err (!%p1096_p10)
}
  0x1c   :  { %s1100_s23 = scalar_lea.vmem %s1309_s27, 4096  ;;  %p1105_p12 = scmp.lt.s32.totalorder %s1309_s27, %s1309_s27 }
  0x1d   :  { %p1101_p11 = scmp.ne.s32.totalorder %s1309_s27, %s1100_s23  ;;  %p1106_p13 = scmp.lt.s32.totalorder %s1100_s23, %s1100_s23 }
  0x1f   :  { %p1107_p0 = por %p1106_p13, %p1105_p12 }
  0x21   :  { %p1108_p1 = pnand %p1107_p0, %p1101_p11 }
  0x23   :  { %1111 = shalt.err (!%p1108_p1)
}
  0x24   :  { %s1256_s1 = smov 256   ;;  %s1257_s24 = smov 16  }
  0x25   :  { %60 = dma.hbm_to_vmem [thread:$0]  %s1441_s3, 4096, %s1309_s27, [#allocation9], %s1256_s1, %s1256_s1, %s1257_s24  }
  0x26   :  { %s1258_s28 = smov [#allocation11]   ;;  %s1112_s9 = scalar_lea.hbm %s1443_s5, 4096 }
  0x27   :  { %s76_s29 = sshll.u32 %s1258_s28, 4  ;;  %p1113_p2 = scmp.ne.s32.totalorder %s1443_s5, %s1112_s9  ;;  %s77_s29 = int_to_ptr.vmem [resolvable:$true] %s76_s29 }
  0x28   :  { %p1116_p3 = scmp.lt.u32.totalorder %s1112_s9, %s1443_s5 }
  0x2a   :  { %p1118_p4 = pnand %p1116_p3, %p1113_p2 }
  0x2c   :  { %1121 = shalt.err (!%p1118_p4)
}
  0x2d   :  { %s1122_s14 = scalar_lea.vmem %s77_s29, 4096  ;;  %p1127_p6 = scmp.lt.s32.totalorder %s77_s29, %s77_s29 }
  0x2e   :  { %p1123_p5 = scmp.ne.s32.totalorder %s77_s29, %s1122_s14  ;;  %p1128_p7 = scmp.lt.s32.totalorder %s1122_s14, %s1122_s14 }
  0x30   :  { %p1129_p8 = por %p1128_p7, %p1127_p6 }
  0x32   :  { %p1130_p9 = pnand %p1129_p8, %p1123_p5 }
  0x34   :  { %1133 = shalt.err (!%p1130_p9)
}
  0x35   :  { %s1259_s3 = smov 64   ;;  %s1260_s27 = smov 4  }
  0x36   :  { %82 = dma.hbm_to_vmem [thread:$0]  %s1443_s5, 4096, %s77_s29, [#allocation12], %s1259_s3, %s1259_s3, %s1260_s27  }
  0x37   :  { %s1261_s17 = smov [#allocation2]   ;;  %s1134_s21 = scalar_lea.hbm %s1438_s0, 256 }
  0x38   :  { %s22_s18 = sshll.u32 %s1261_s17, 4  ;;  %p1135_p10 = scmp.ne.s32.totalorder %s1438_s0, %s1134_s21  ;;  %s23_s18 = int_to_ptr.vmem [resolvable:$true] %s22_s18 }
  0x39   :  { %p1138_p11 = scmp.lt.u32.totalorder %s1134_s21, %s1438_s0 }
  0x3b   :  { %p1140_p12 = pnand %p1138_p11, %p1135_p10 }
  0x3d   :  { %1143 = shalt.err (!%p1140_p12)
}
  0x3e   :  { %s1144_s25 = scalar_lea.vmem %s23_s18, 256  ;;  %p1149_p0 = scmp.lt.s32.totalorder %s23_s18, %s23_s18 }
  0x3f   :  { %p1145_p13 = scmp.ne.s32.totalorder %s23_s18, %s1144_s25  ;;  %p1150_p1 = scmp.lt.s32.totalorder %s1144_s25, %s1144_s25 }
  0x41   :  { %p1151_p2 = por %p1150_p1, %p1149_p0 }
  0x43   :  { %p1152_p3 = pnand %p1151_p2, %p1145_p13 }
  0x45   :  { %1155 = shalt.err (!%p1152_p3)
}
  0x46   :  { %s1262_s5 = smov 128   ;;  %s1263_s26 = smov 8  }
  0x47   :  { %28 = dma.hbm_to_vmem [thread:$0]  %s1438_s0, 256, %s23_s18, [#allocation3], %s1262_s5, %s1262_s5, %s1263_s26  }
  0x48   :  { %s1264_s30 = smov [#allocation7]   ;;  %s1265_s9 = smov [#allocation10]  }
  0x49   :  { %s45_s8 = sshll.u32 %s1264_s30, 4  ;;  %s67_s10 = sshll.u32 %s1265_s9, 4  ;;  %s46_s8 = int_to_ptr.vmem [resolvable:$true] %s45_s8  ;;  %s68_s10 = int_to_ptr.vmem [resolvable:$true] %s67_s10 }
  0x4a   :  { %s1156_s13 = scalar_lea.hbm %s1440_s2, 16 }
  0x4b   :  { %p1157_p4 = scmp.ne.s32.totalorder %s1440_s2, %s1156_s13  ;;  %p1160_p5 = scmp.lt.u32.totalorder %s1156_s13, %s1440_s2 }
  0x4d   :  { %p1162_p6 = pnand %p1160_p5, %p1157_p4 }
  0x4f   :  { %1165 = shalt.err (!%p1162_p6)
}
  0x50   :  { %s1166_s0 = scalar_lea.vmem %s46_s8, 16  ;;  %s1170_s16 = scalar_lea.vmem %s46_s8, 32 }
  0x51   :  { %p1167_p7 = scmp.ne.s32.totalorder %s46_s8, %s1166_s0  ;;  %p1171_p8 = scmp.lt.s32.totalorder %s46_s8, %s46_s8 }
  0x52   :  { %p1172_p9 = scmp.lt.s32.totalorder %s1170_s16, %s1166_s0 }
  0x54   :  { %p1173_p10 = por %p1172_p9, %p1171_p8 }
  0x56   :  { %p1174_p11 = pnand %p1173_p10, %p1167_p7 }
  0x58   :  { %1177 = shalt.err (!%p1174_p11)
}
  0x59   :  { %48 = dma.hbm_to_vmem [thread:$0]  %s1440_s2, 16, %s46_s8, [#allocation6]  }
  0x5a   :  { %s1178_s21 = scalar_lea.hbm %s1442_s4, 64 }
  0x5b   :  { %p1179_p12 = scmp.ne.s32.totalorder %s1442_s4, %s1178_s21  ;;  %p1182_p13 = scmp.lt.u32.totalorder %s1178_s21, %s1442_s4 }
  0x5d   :  { %p1184_p0 = pnand %p1182_p13, %p1179_p12 }
  0x5f   :  { %1187 = shalt.err (!%p1184_p0)
}
  0x60   :  { %s1188_s25 = scalar_lea.vmem %s68_s10, 64  ;;  %p1193_p2 = scmp.lt.s32.totalorder %s68_s10, %s68_s10 }
  0x61   :  { %p1189_p1 = scmp.ne.s32.totalorder %s68_s10, %s1188_s25  ;;  %p1194_p3 = scmp.lt.s32.totalorder %s1188_s25, %s1188_s25 }
  0x63   :  { %p1195_p4 = por %p1194_p3, %p1193_p2 }
  0x65   :  { %p1196_p5 = pnand %p1195_p4, %p1189_p1 }
  0x67   :  { %1199 = shalt.err (!%p1196_p5)
}
  0x68   :  { %70 = dma.hbm_to_vmem [thread:$0]  %s1442_s4, 64, %s68_s10, [#allocation9]  }
  0x69   :  { %s1266_s29 = smov [#allocation13]   ;;  %s1200_s11 = scalar_lea.hbm %s1444_s6, 16 }
  0x6a   :  { %s89_s30 = sshll.u32 %s1266_s29, 4  ;;  %p1201_p6 = scmp.ne.s32.totalorder %s1444_s6, %s1200_s11  ;;  %s90_s30 = int_to_ptr.vmem [resolvable:$true] %s89_s30 }
  0x6b   :  { %p1204_p7 = scmp.lt.u32.totalorder %s1200_s11, %s1444_s6 }
  0x6d   :  { %p1206_p8 = pnand %p1204_p7, %p1201_p6 }
  0x6f   :  { %1209 = shalt.err (!%p1206_p8)
}
  0x70   :  { %s1210_s27 = scalar_lea.vmem %s90_s30, 16  ;;  %s1214_s4 = scalar_lea.vmem %s90_s30, 32 }
  0x71   :  { %p1211_p9 = scmp.ne.s32.totalorder %s90_s30, %s1210_s27  ;;  %p1215_p10 = scmp.lt.s32.totalorder %s90_s30, %s90_s30 }
  0x72   :  { %p1216_p11 = scmp.lt.s32.totalorder %s1214_s4, %s1210_s27 }
  0x74   :  { %p1217_p12 = por %p1216_p11, %p1215_p10 }
  0x76   :  { %p1218_p13 = pnand %p1217_p12, %p1211_p9 }
  0x78   :  { %1221 = shalt.err (!%p1218_p13)
}
  0x79   :  { %92 = dma.hbm_to_vmem [thread:$0]  %s1444_s6, 16, %s90_s30, [#allocation12]  }
  0x7a   :  { %1244 = dma.done.wait [#allocation3], 256  }
  0x7b   :  { %1245 = vsyncadd [#allocation3], 4294967040 }
  0x7c   :  { %1246 = dma.done.wait [#allocation6], 32  }
  0x7d   :  { %1247 = vsyncadd [#allocation6], 4294967264 }
  0x7e   :  { %1248 = dma.done.wait [#allocation9], 4160  }
  0x7f   :  { %1249 = vsyncadd [#allocation9], 4294963136 }
  0x80   :  { %1250 = dma.done.wait [#allocation12], 4112  }
  0x81   :  { %1251 = vsyncadd [#allocation12], 4294963184  ;;  %v1403_v0 = vld [vmem:[#allocation2] sm:$0xff]  ;;  %v1405_v1 = vld [vmem:[#allocation2 + $0x8] sm:$0xff]  ;;  %v1267_v36 = vmov 0   ;;  %s1268_s6 = smov [#allocation14]  }
  0x82   :  { %117 = vadd.xlane.f32.xlu0 %v1403_v0  ;;  %v980_v10 = vld [vmem:[#allocation8 + $0x4] ss:$16 sps:$4 sm:$0xff]   ;;  %v982_v11 = vld [vmem:[#allocation8 + $0xc] ss:$16 sps:$4 sm:$0xff]   ;;  %v984_v12 = vld [vmem:[#allocation8] ss:$16 sps:$4 sm:$0xff]   ;;  %484 = vmatprep.mubr.bf16.mxu0 %v1267_v36 }
  0x83   :  { %v985_v13 = vld [vmem:[#allocation8 + $0x8] ss:$16 sps:$4 sm:$0xff]   ;;  %452 = vmatprep.subr.bf16.mxu0 %v980_v10  ;;  %495 = vmatprep.subr.bf16.mxu1 %v982_v11  ;;  %v986_v14 = vld [vmem:[#allocation8 + $0x24] ss:$16 sps:$4 sm:$0xff]   ;;  %v988_v15 = vld [vmem:[#allocation8 + $0x2c] ss:$16 sps:$4 sm:$0xff]  }
  0x84   :  { %453 = vmatpush1.bf16.msra.mxu0 %v984_v12  ;;  %496 = vmatpush1.bf16.msra.mxu1 %v985_v13  ;;  %v990_v16 = vld [vmem:[#allocation8 + $0x20] ss:$16 sps:$4 sm:$0xff]   ;;  %v991_v17 = vld [vmem:[#allocation8 + $0x28] ss:$16 sps:$4 sm:$0xff]   ;;  %v992_v18 = vld [vmem:[#allocation8 + $0x44] ss:$16 sps:$4 sm:$0xff]  }
  0x85   :  { %454 = vmatprep.subr.bf16.mxu0 %v986_v14  ;;  %497 = vmatprep.subr.bf16.mxu1 %v988_v15  ;;  %v994_v19 = vld [vmem:[#allocation8 + $0x4c] ss:$16 sps:$4 sm:$0xff]   ;;  %v996_v20 = vld [vmem:[#allocation8 + $0x40] ss:$16 sps:$4 sm:$0xff]   ;;  %v997_v21 = vld [vmem:[#allocation8 + $0x48] ss:$16 sps:$4 sm:$0xff]  }
  0x86   :  { %119 = vadd.xlane.f32.xlu0 %v1405_v1  ;;  %v998_v22 = vld [vmem:[#allocation8 + $0x64] ss:$16 sps:$4 sm:$0xff]   ;;  %v1000_v23 = vld [vmem:[#allocation8 + $0x6c] ss:$16 sps:$4 sm:$0xff]   ;;  %v1002_v24 = vld [vmem:[#allocation8 + $0x60] ss:$16 sps:$4 sm:$0xff]   ;;  %527 = vmatprep.mubr.bf16.mxu1 %v1267_v36 }
  0x87   :  { %v1003_v25 = vld [vmem:[#allocation8 + $0x68] ss:$16 sps:$4 sm:$0xff]   ;;  %v1004_v26 = vld [vmem:[#allocation8 + $0x84] ss:$16 sps:$4 sm:$0xff]   ;;  %v1006_v27 = vld [vmem:[#allocation8 + $0x8c] ss:$16 sps:$4 sm:$0xff]  }
  0x88   :  { %455 = vmatpush1.bf16.msra.mxu0 %v990_v16  ;;  %498 = vmatpush1.bf16.msra.mxu1 %v991_v17  ;;  %v1008_v28 = vld [vmem:[#allocation8 + $0x80] ss:$16 sps:$4 sm:$0xff]   ;;  %v1009_v29 = vld [vmem:[#allocation8 + $0x88] ss:$16 sps:$4 sm:$0xff]   ;;  %v1010_v30 = vld [vmem:[#allocation8 + $0xa4] ss:$16 sps:$4 sm:$0xff]  }
  0x89   :  { %456 = vmatprep.subr.bf16.mxu0 %v992_v18  ;;  %499 = vmatprep.subr.bf16.mxu1 %v994_v19  ;;  %v1012_v31 = vld [vmem:[#allocation8 + $0xac] ss:$16 sps:$4 sm:$0xff]   ;;  %v1014_v32 = vld [vmem:[#allocation8 + $0xa0] ss:$16 sps:$4 sm:$0xff]   ;;  %v1015_v33 = vld [vmem:[#allocation8 + $0xa8] ss:$16 sps:$4 sm:$0xff]  }
  0x8a   :  { %v1016_v34 = vld [vmem:[#allocation8 + $0xc4] ss:$16 sps:$4 sm:$0xff]   ;;  %v1018_v35 = vld [vmem:[#allocation8 + $0xcc] ss:$16 sps:$4 sm:$0xff]   ;;  %v1020_v37 = vld [vmem:[#allocation8 + $0xc0] ss:$16 sps:$4 sm:$0xff]  }
  0x8b   :  { %v1021_v38 = vld [vmem:[#allocation8 + $0xc8] ss:$16 sps:$4 sm:$0xff]   ;;  %v1022_v39 = vld [vmem:[#allocation8 + $0xe4] ss:$16 sps:$4 sm:$0xff]   ;;  %v1024_v40 = vld [vmem:[#allocation8 + $0xec] ss:$16 sps:$4 sm:$0xff]  }
  0x8c   :  { %457 = vmatpush1.bf16.msra.mxu0 %v996_v20  ;;  %500 = vmatpush1.bf16.msra.mxu1 %v997_v21  ;;  %v1026_v41 = vld [vmem:[#allocation8 + $0xe0] ss:$16 sps:$4 sm:$0xff]   ;;  %v1027_v42 = vld [vmem:[#allocation8 + $0xe8] ss:$16 sps:$4 sm:$0xff]   ;;  %v854_v63 = vld [vmem:[#allocation5] ss:$0 sm:$0xff] }
  0x8d   :  { %458 = vmatprep.subr.bf16.mxu0 %v998_v22  ;;  %501 = vmatprep.subr.bf16.mxu1 %v1000_v23  ;;  %v1028_v43 = vld [vmem:[#allocation11 + $0x40] sm:$0xff]   ;;  %v1032_v14 = vld [vmem:[#allocation11 + $0x48] sm:$0xff]   ;;  %v1036_v17 = vld [vmem:[#allocation11 + $0x50] sm:$0xff]   ;;  %s839_s0 = sshll.u32 %s1268_s6, 4  ;;  %s840_s0 = int_to_ptr.vmem [resolvable:$true] %s839_s0 }
  0x8e   :  { %v1029_v44 = vld [vmem:[#allocation11 + $0xc0] sm:$0xff]   ;;  %v1033_v15 = vld [vmem:[#allocation11 + $0xc8] sm:$0xff]   ;;  %v1038_v18 = vld [vmem:[#allocation11 + $0x10] sm:$0xff]   ;;  %s1222_s16 = scalar_lea.vmem %s840_s0, 256  ;;  %p1227_p1 = scmp.lt.s32.totalorder %s840_s0, %s840_s0 }
  0x8f   :  { %v1030_v11 = vld [vmem:[#allocation11] sm:$0xff]   ;;  %v1034_v16 = vld [vmem:[#allocation11 + $0x8] sm:$0xff]   ;;  %v1039_v19 = vld [vmem:[#allocation11 + $0x90] sm:$0xff]   ;;  %p1223_p0 = scmp.ne.s32.totalorder %s840_s0, %s1222_s16  ;;  %p1228_p2 = scmp.lt.s32.totalorder %s1222_s16, %s1222_s16 }
  0x90   :  { %459 = vmatpush1.bf16.msra.mxu0 %v1002_v24  ;;  %502 = vmatpush1.bf16.msra.mxu1 %v1003_v25  ;;  %v1031_v12 = vld [vmem:[#allocation11 + $0x80] sm:$0xff]   ;;  %v1040_v20 = vld [vmem:[#allocation11 + $0x58] sm:$0xff]  }
  0x91   :  { %460 = vmatprep.subr.bf16.mxu0 %v1004_v26  ;;  %503 = vmatprep.subr.bf16.mxu1 %v1006_v27  ;;  %v1041_v21 = vld [vmem:[#allocation11 + $0xd8] sm:$0xff]   ;;  %v1044_v24 = vld [vmem:[#allocation11 + $0x60] sm:$0xff]   ;;  %p1229_p3 = por %p1228_p2, %p1227_p1 }
  0x92   :  { %v1042_v22 = vld [vmem:[#allocation11 + $0x18] sm:$0xff]   ;;  %v1045_v25 = vld [vmem:[#allocation11 + $0xe0] sm:$0xff]  }
  0x93   :  { %v1043_v23 = vld [vmem:[#allocation11 + $0x98] sm:$0xff]   ;;  %v1046_v26 = vld [vmem:[#allocation11 + $0x20] sm:$0xff]   ;;  %p1230_p4 = pnand %p1229_p3, %p1223_p0 }
  0x94   :  { %461 = vmatpush1.bf16.msra.mxu0 %v1008_v28  ;;  %504 = vmatpush1.bf16.msra.mxu1 %v1009_v29  ;;  %v1047_v27 = vld [vmem:[#allocation11 + $0xa0] sm:$0xff]   ;;  %v1048_v28 = vld [vmem:[#allocation11 + $0x68] sm:$0xff]   ;;  %v1056_v36 = vld [vmem:[#allocation11 + $0x78] sm:$0xff]  }
  0x95   :  { %462 = vmatprep.subr.bf16.mxu0 %v1010_v30  ;;  %505 = vmatprep.subr.bf16.mxu1 %v1012_v31  ;;  %v1049_v29 = vld [vmem:[#allocation11 + $0xe8] sm:$0xff]  }
  0x96   :  { %v1050_v30 = vld [vmem:[#allocation11 + $0x28] sm:$0xff]  }
  0x97   :  { %v1051_v31 = vld [vmem:[#allocation11 + $0xa8] sm:$0xff]  }
  0x98   :  { %463 = vmatpush1.bf16.msra.mxu0 %v1014_v32  ;;  %506 = vmatpush1.bf16.msra.mxu1 %v1015_v33  ;;  %v1052_v32 = vld [vmem:[#allocation11 + $0x70] sm:$0xff]  }
  0x99   :  { %464 = vmatprep.subr.bf16.mxu0 %v1016_v34  ;;  %507 = vmatprep.subr.bf16.mxu1 %v1018_v35  ;;  %v1053_v33 = vld [vmem:[#allocation11 + $0xf0] sm:$0xff]  }
  0x9a   :  { %v1054_v34 = vld [vmem:[#allocation11 + $0x30] sm:$0xff]  }
  0x9b   :  { %v1055_v35 = vld [vmem:[#allocation11 + $0xb0] sm:$0xff]  }
  0x9c   :  { %465 = vmatpush1.bf16.msra.mxu0 %v1020_v37  ;;  %508 = vmatpush1.bf16.msra.mxu1 %v1021_v38  ;;  %v1057_v37 = vld [vmem:[#allocation11 + $0xf8] sm:$0xff]  }
  0x9d   :  { %466 = vmatprep.subr.bf16.mxu0 %v1022_v39  ;;  %509 = vmatprep.subr.bf16.mxu1 %v1024_v40  ;;  %v1058_v38 = vld [vmem:[#allocation11 + $0x38] sm:$0xff]   ;;  %v272_v40 = vlaneseq }
  0x9e   :  { %v1059_v39 = vld [vmem:[#allocation11 + $0xb8] sm:$0xff]  }
  0xa0   :  { %467 = vmatpush1.bf16.msra.mxu0 %v1026_v41  ;;  %510 = vmatpush1.bf16.msra.mxu1 %v1027_v42  ;;  %v273_v41 = vshrl.u32 %v272_v40, 7 }
  0xa1   :  { %921 = vmatprep.subr.bf16.mxu0 %v1028_v43  ;;  %943 = vmatprep.subr.bf16.mxu1 %v1029_v44  ;;  %v204_v44 = vld [vmem:[#allocation10] sm:$0xf] }
  0xa2   :  { %v274_v42 = vsub.s32 0, %v273_v41  ;;  %v282_v43 = vsub.s32 2, %v273_v41 }
 0x10f   :  { %v118_v2 = vpop.xlane.xlu0 %117 }
 0x110   :  { %v122_v3 = vmul.f32 0.0078125, %v118_v2 }
 0x112   :  { %v1410_v4 = vsub.f32 %v1403_v0, %v122_v3 }
 0x113   :  { %v120_v5 = vpop.xlane.xlu0 %119 }
 0x114   :  { %v123_v6 = vmul.f32 0.0078125, %v120_v5  ;;  %v126_v7 = vmul.f32 %v1410_v4, %v1410_v4 }
 0x116   :  { %v1415_v8 = vsub.f32 %v1405_v1, %v123_v6  ;;  %128 = vadd.xlane.f32.xlu1 %v126_v7  ;;  %v855_v6 = vld [vmem:[#allocation7] ss:$0 sm:$0xff] }
 0x118   :  { %v127_v9 = vmul.f32 %v1415_v8, %v1415_v8 }
 0x11a   :  { %130 = vadd.xlane.f32.xlu1 %v127_v9 }
 0x1a3   :  { %v129_v45 = vpop.xlane.xlu1 %128 }
 0x1a4   :  { %v132_v46 = vmul.f32 0.007874016, %v129_v45  ;;  %v278_v45 = vsub.s32 1, %v273_v41 }
 0x1a6   :  { %1060 = vrsqrt.f32 %v132_v46  ;;  %vm136_vm0 = vcmp.eq.f32.partialorder %v132_v46, inf  ;;  %v139_v51 = vand.u32 2147483648, %v132_v46  ;;  %vm138_vm1 = vcmp.eq.f32.partialorder %v132_v46, 0.0 }
 0x1a7   :  { %v131_v47 = vpop.xlane.xlu1 %130 }
 0x1a8   :  { %v133_v48 = vmul.f32 0.007874016, %v131_v47  ;;  %v275_v47 = vrot.slane %v204_v44, %v274_v42 }
 0x1aa   :  { %1062 = vrsqrt.f32 %v133_v48  ;;  %vm143_vm2 = vcmp.eq.f32.partialorder %v133_v48, inf  ;;  %v146_v57 = vand.u32 2147483648, %v133_v48  ;;  %vm145_vm3 = vcmp.eq.f32.partialorder %v133_v48, 0.0 }
 0x1b0   :  { %v1061_v49 = vpop.eup %1060 }
 0x1b1   :  { %v135_v50 = vmul.f32 %v1061_v49, %v132_v46  ;;  %v279_v49 = vrot.slane %v204_v44, %v278_v45 }
 0x1b3   :  { %v137_v52 = vsel %vm136_vm0, %v132_v46, %v135_v50  ;;  %v286_v46 = vsub.s32 3, %v273_v41 }
 0x1b4   :  { %v1063_v53 = vpop.eup %1062  ;;  %v140_v54 = vsel %vm138_vm1, %v139_v51, %v137_v52 }
 0x1b5   :  { %v148_v55 = vadd.f32 1e-06, %v140_v54  ;;  %v142_v56 = vmul.f32 %v1063_v53, %v133_v48  ;;  %v287_v50 = vrot.slane %v204_v44, %v286_v46 }
 0x1b7   :  { %v144_v58 = vsel %vm143_vm2, %v133_v48, %v142_v56  ;;  %1064 = vrcp.f32 %v148_v55  ;;  %v283_v48 = vrot.slane %v204_v44, %v282_v43 }
 0x1b8   :  { %v147_v59 = vsel %vm145_vm3, %v146_v57, %v144_v58 }
 0x1b9   :  { %v149_v60 = vadd.f32 1e-06, %v147_v59 }
 0x1bb   :  { %1066 = vrcp.f32 %v149_v60 }
 0x1c1   :  { %v1065_v61 = vpop.eup %1064 }
 0x1c2   :  { %v152_v62 = vmul.f32 %v1065_v61, %v1410_v4  ;;  %v1035_v4 = vld [vmem:[#allocation11 + $0x88] sm:$0xff]  }
 0x1c4   :  { %v161_v5 = vmul.f32 %v854_v63, %v152_v62 }
 0x1c5   :  { %v1067_v2 = vpop.eup %1066 }
 0x1c6   :  { %v153_v3 = vmul.f32 %v1067_v2, %v1415_v8  ;;  %v170_v9 = vadd.f32 %v855_v6, %v161_v5  ;;  %v1037_v8 = vld [vmem:[#allocation11 + $0xd0] sm:$0xff]  }
 0x1c8   :  { %v162_v7 = vmul.f32 %v854_v63, %v153_v3 }
 0x1ca   :  { %v171_v10 = vadd.f32 %v855_v6, %v162_v7 }
 0x1cc   :  { %v270_v13 = vpack.c.bf16 %v171_v10, %v170_v9 }
 0x1ce   :  { %485 = vmatmul.mubr.bf16.vlgmr.msra.gmra.mrb[0].mxu0 %v270_v13  ;;  %528 = vmatmul.mubr.bf16.vlgmr.msra.gmra.mrb[0].mxu1 %v270_v13 }
 0x1cf   :  { %922 = vmatpush3.bf16.msra.mxu0 %v1030_v11  ;;  %944 = vmatpush3.bf16.msra.mxu1 %v1031_v12 }
 0x1d0   :  { %923 = vmatprep.subr.bf16.mxu0 %v1032_v14  ;;  %945 = vmatprep.subr.bf16.mxu1 %v1033_v15 }
 0x1d3   :  { %924 = vmatpush3.bf16.msra.mxu0 %v1034_v16  ;;  %946 = vmatpush3.bf16.msra.mxu1 %v1035_v4 }
 0x1d4   :  { %925 = vmatprep.subr.bf16.mxu0 %v1036_v17  ;;  %947 = vmatprep.subr.bf16.mxu1 %v1037_v8 }
 0x1d7   :  { %926 = vmatpush3.bf16.msra.mxu0 %v1038_v18  ;;  %948 = vmatpush3.bf16.msra.mxu1 %v1039_v19  ;;  %v888_v19 = vld [vmem:[#allocation13] ss:$0 sm:$0xff] }
 0x1d8   :  { %927 = vmatprep.subr.bf16.mxu0 %v1040_v20  ;;  %949 = vmatprep.subr.bf16.mxu1 %v1041_v21 }
 0x1db   :  { %928 = vmatpush3.bf16.msra.mxu0 %v1042_v22  ;;  %950 = vmatpush3.bf16.msra.mxu1 %v1043_v23 }
 0x1dc   :  { %929 = vmatprep.subr.bf16.mxu0 %v1044_v24  ;;  %951 = vmatprep.subr.bf16.mxu1 %v1045_v25 }
 0x1df   :  { %930 = vmatpush3.bf16.msra.mxu0 %v1046_v26  ;;  %952 = vmatpush3.bf16.msra.mxu1 %v1047_v27 }
 0x1e0   :  { %931 = vmatprep.subr.bf16.mxu0 %v1048_v28  ;;  %953 = vmatprep.subr.bf16.mxu1 %v1049_v29 }
 0x1e3   :  { %932 = vmatpush3.bf16.msra.mxu0 %v1050_v30  ;;  %954 = vmatpush3.bf16.msra.mxu1 %v1051_v31 }
 0x1e4   :  { %933 = vmatprep.subr.bf16.mxu0 %v1052_v32  ;;  %955 = vmatprep.subr.bf16.mxu1 %v1053_v33 }
 0x1e7   :  { %934 = vmatpush3.bf16.msra.mxu0 %v1054_v34  ;;  %956 = vmatpush3.bf16.msra.mxu1 %v1055_v35 }
 0x1e8   :  { %935 = vmatprep.subr.bf16.mxu0 %v1056_v36  ;;  %957 = vmatprep.subr.bf16.mxu1 %v1057_v37 }
 0x1eb   :  { %936 = vmatpush3.bf16.msra.mxu0 %v1058_v38  ;;  %958 = vmatpush3.bf16.msra.mxu1 %v1059_v39 }
 0x2a1   :  { %v486_v51 = vpop.f32.mrb[0].mxu0  ;;  %v529_v52 = vpop.f32.mrb[0].mxu1 }
 0x2a2   :  { %v487_v53 = vadd.f32 %v486_v51, %v275_v47  ;;  %v530_v54 = vadd.f32 %v529_v52, %v283_v48  ;;  %v488_v55 = vpop.f32.mrb[1].mxu0  ;;  %v531_v56 = vpop.f32.mrb[1].mxu1 }
 0x2a3   :  { %v489_v57 = vadd.f32 %v488_v55, %v279_v49  ;;  %v532_v58 = vadd.f32 %v531_v56, %v287_v50  ;;  %v490_v59 = vpop.f32.mrb[2].mxu0  ;;  %v533_v60 = vpop.f32.mrb[2].mxu1 }
 0x2a4   :  { %v491_v61 = vadd.f32 %v490_v59, %v275_v47  ;;  %v534_v62 = vadd.f32 %v533_v60, %v283_v48  ;;  %v492_v63 = vpop.f32.mrb[3].mxu0  ;;  %v535_v2 = vpop.f32.mrb[3].mxu1  ;;  %v538_v6 = vmax.f32 %v487_v53, 0.0  ;;  %v540_v7 = vmax.f32 %v530_v54, 0.0 }
 0x2a5   :  { %v493_v3 = vadd.f32 %v492_v63, %v279_v49  ;;  %v536_v5 = vadd.f32 %v535_v2, %v287_v50  ;;  %v539_v11 = vmax.f32 %v489_v57, 0.0  ;;  %v541_v12 = vmax.f32 %v532_v58, 0.0 }
 0x2a6   :  { %v542_v9 = vmax.f32 %v491_v61, 0.0  ;;  %v544_v10 = vmax.f32 %v534_v62, 0.0 }
 0x2a7   :  { %v543_v13 = vmax.f32 %v493_v3, 0.0  ;;  %v545_v14 = vmax.f32 %v536_v5, 0.0 }
 0x2a8   :  { %v546_v15 = vpack.c.bf16 %v542_v9, %v538_v6  ;;  %v548_v16 = vpack.c.bf16 %v544_v10, %v540_v7 }
 0x2a9   :  { %v547_v4 = vpack.c.bf16 %v543_v13, %v539_v11  ;;  %v549_v17 = vpack.c.bf16 %v545_v14, %v541_v12 }
 0x2ab   :  { %780 = vmatprep.mubr.bf16.mxu0 %v547_v4  ;;  %821 = vmatprep.mubr.bf16.mxu1 %v549_v17 }
 0x2ac   :  { %781 = vmatmul.mubr.bf16.vlgmr.msra.gmra.mrb[4].mxu0 %v546_v15  ;;  %822 = vmatmul.mubr.bf16.vlgmr.msra.gmra.mrb[4].mxu1 %v548_v16 }
 0x37f   :  { %v937_v8 = vpop.f32.mrb[4].mxu0  ;;  %v959_v18 = vpop.f32.mrb[4].mxu1 }
 0x380   :  { %v938_v20 = vpop.f32.mrb[5].mxu0  ;;  %v960_v21 = vpop.f32.mrb[5].mxu1 }
 0x381   :  { %v939_v22 = vadd.f32 %v938_v20, %v937_v8  ;;  %v961_v23 = vadd.f32 %v960_v21, %v959_v18  ;;  %v940_v24 = vpop.f32.mrb[6].mxu0  ;;  %v962_v25 = vpop.f32.mrb[6].mxu1 }
 0x382   :  { %v941_v26 = vpop.f32.mrb[7].mxu0  ;;  %v963_v27 = vpop.f32.mrb[7].mxu1 }
 0x383   :  { %v783_v28 = vadd.f32 %v939_v22, %v888_v19  ;;  %v942_v29 = vadd.f32 %v941_v26, %v940_v24  ;;  %v964_v30 = vadd.f32 %v963_v27, %v962_v25 }
 0x385   :  { %v824_v31 = vadd.f32 %v961_v23, %v783_v28  ;;  %v786_v32 = vadd.f32 %v942_v29, %v888_v19 }
 0x387   :  { %v830_v33 = vadd.f32 %v824_v31, %v1403_v0  ;;  %v827_v34 = vadd.f32 %v964_v30, %v786_v32 }
 0x389   :  { %832 = vst [vmem:[#allocation14] sm:$0xff] %v830_v33  ;;  %v831_v35 = vadd.f32 %v827_v34, %v1405_v1 }
 0x38b   :  { %833 = vst [vmem:[#allocation14 + $0x8] sm:$0xff] %v831_v35 }
 0x38c   :  { %1233 = shalt.err (!%p1230_p4)
}
 0x38d   :  { %s1234_s19 = scalar_lea.hbm %s1445_s7, 256 }
 0x38e   :  { %p1235_p5 = scmp.ne.s32.totalorder %s1445_s7, %s1234_s19  ;;  %p1238_p6 = scmp.lt.u32.totalorder %s1234_s19, %s1445_s7 }
 0x390   :  { %p1240_p7 = pnand %p1238_p6, %p1235_p5 }
 0x392   :  { %1243 = shalt.err (!%p1240_p7)
}
 0x393   :  { %845 = dma.vmem_to_hbm [thread:$0]  %s840_s0, 256, %s1445_s7, [#allocation4], %s1262_s5, %s1262_s5, %s1263_s26  }
 0x394   :  { %1252 = dma.done.wait [#allocation4], 256  }
 0x395   :  { %1253 = vsyncadd [#allocation4], 4294967040 }
 0x396   :  { %849 = vsyncpa [#allocation3], 1 }
 0x397   :  { %850 = vsyncpa [#allocation6], 1 }
 0x398   :  { %851 = vsyncpa [#allocation9], 1 }
 0x399   :  { %852 = vsyncpa [#allocation12], 1 }
 0x39a   :  { %853 = vsyncpa [#allocation4], 1 }

</bundles_post_ra>
